<compile_context>
chip_gen: v7x
topology: tpu7x:2x2x1
jax: 0.10.0
libtpu: 0.0.40
codegen_flags: <defaults>
</compile_context>

<pallas_src>
import math
import jax
import jax.numpy as jnp
from jax import lax
from jax.experimental import pallas as pl
from jax.experimental.pallas import tpu as pltpu

# ----- problem sizes (small, consistent with the module) -----
BATCH = 2
SEQ = 8
HEADS = 4
D_MODEL = 32
D_K = D_MODEL // HEADS


def mha_kernel(x_ref, wqkv_ref, wo_ref, o_ref):
    """Fused multi-head attention forward, whole problem in one grid step.

    x_ref:    (3, B*S, D) VMEM — stacked [q; k; v] activations, flattened over batch*seq
    wqkv_ref: (3, D, D)   VMEM — stacked [Wq; Wk; Wv]
    wo_ref:   (D, D)      VMEM — output projection weight
    o_ref:    (B*S, D)    VMEM — output
    """
    n = BATCH * SEQ

    x = x_ref[...]          # (3, N, D)
    w = wqkv_ref[...]       # (3, D, D)
    wo = wo_ref[...]        # (D, D)

    # One batched MXU dot for all three projections: (3, N, D) x (3, D, D) -> (3, N, D)
    proj = lax.dot_general(
        x, w,
        dimension_numbers=(((2,), (1,)), ((0,), (0,))),
        preferred_element_type=jnp.float32)

    # Fold 1/sqrt(d_k) into q once (instead of scaling every head's (S,S) scores).
    q = proj[0] * (1.0 / math.sqrt(D_K))
    k = proj[1]
    v = proj[2]

    # Re-expose the batch dim. Cheap: splits the row dim at an 8-row (sublane-tile)
    # boundary while leaving the lane dim untouched.
    qb = q.reshape(BATCH, SEQ, D_MODEL)
    kb = k.reshape(BATCH, SEQ, D_MODEL)
    vb = v.reshape(BATCH, SEQ, D_MODEL)

    # Per-head attention (static unroll over H=4 heads), batched over the batch dim.
    # The output projection is folded into the head accumulation, so no (S, D)
    # concat of head outputs is ever materialized.
    acc = jnp.zeros((n, D_MODEL), jnp.float32)
    for h in range(HEADS):
        sl = slice(h * D_K, (h + 1) * D_K)
        qh = qb[:, :, sl]   # (B, S, d_k)
        kh = kb[:, :, sl]
        vh = vb[:, :, sl]

        # scores: contract the last dims directly (no explicit transpose of kh)
        s = jnp.einsum("bqd,bkd->bqk", qh, kh,
                       preferred_element_type=jnp.float32)          # (B, S, S)

        # numerically-stable softmax over the key axis; divide via EUP reciprocal
        m = jnp.max(s, axis=-1, keepdims=True)
        e = jnp.exp(s - m)
        denom = jnp.sum(e, axis=-1, keepdims=True)
        p = e * pl.reciprocal(denom, approx=True)

        ctx = jnp.einsum("bqk,bkd->bqd", p, vh,
                         preferred_element_type=jnp.float32)        # (B, S, d_k)

        # out += ctx_h @ Wo[h*d_k:(h+1)*d_k, :]  (concat + output projection, fused)
        acc = acc + jnp.dot(ctx.reshape(n, D_K), wo[sl, :],
                            preferred_element_type=jnp.float32)

    o_ref[...] = acc.astype(o_ref.dtype)


def multi_head_attention(q, k, v, wq, wk, wv, wo):
    """q, k, v: (B, S, D); w*: (D, D) with y = x @ W convention."""
    B, S, D = q.shape
    n = B * S
    x = jnp.stack([q.reshape(n, D), k.reshape(n, D), v.reshape(n, D)])   # (3, N, D)
    wqkv = jnp.stack([wq, wk, wv])                                       # (3, D, D)

    vmem = pltpu.MemorySpace.VMEM
    out_flat = pl.pallas_call(
        mha_kernel,
        out_shape=jax.ShapeDtypeStruct((n, D), q.dtype),
        in_specs=[
            pl.BlockSpec(memory_space=vmem),
            pl.BlockSpec(memory_space=vmem),
            pl.BlockSpec(memory_space=vmem),
        ],
        out_specs=pl.BlockSpec(memory_space=vmem),
    )(x, wqkv, wo)
    return out_flat.reshape(B, S, D)


def reference_mha(q, k, v, wq, wk, wv, wo):
    """Pure-JAX reference mirroring the PyTorch forward (mask=None, eval mode)."""
    B, S, D = q.shape
    qp = (q @ wq).reshape(B, S, HEADS, D_K).transpose(0, 2, 1, 3)
    kp = (k @ wk).reshape(B, S, HEADS, D_K).transpose(0, 2, 1, 3)
    vp = (v @ wv).reshape(B, S, HEADS, D_K).transpose(0, 2, 1, 3)
    scores = jnp.einsum("bhqd,bhkd->bhqk", qp, kp) / math.sqrt(D_K)
    probs = jax.nn.softmax(scores, axis=-1)
    out = jnp.einsum("bhqk,bhkd->bhqd", probs, vp)
    concat = out.transpose(0, 2, 1, 3).reshape(B, S, D)
    return concat @ wo


if __name__ == "__main__":
    key = jax.random.PRNGKey(0)
    kq, kk, kv, kwq, kwk, kwv, kwo = jax.random.split(key, 7)

    q = jax.random.normal(kq, (BATCH, SEQ, D_MODEL), dtype=jnp.float32)
    k = jax.random.normal(kk, (BATCH, SEQ, D_MODEL), dtype=jnp.float32)
    v = jax.random.normal(kv, (BATCH, SEQ, D_MODEL), dtype=jnp.float32)

    # deterministic parameter init (Linear weights, no bias), stored (in, out)
    scale = 1.0 / math.sqrt(D_MODEL)
    wq = jax.random.uniform(kwq, (D_MODEL, D_MODEL), jnp.float32, -scale, scale)
    wk = jax.random.uniform(kwk, (D_MODEL, D_MODEL), jnp.float32, -scale, scale)
    wv = jax.random.uniform(kwv, (D_MODEL, D_MODEL), jnp.float32, -scale, scale)
    wo = jax.random.uniform(kwo, (D_MODEL, D_MODEL), jnp.float32, -scale, scale)

    out = multi_head_attention(q, k, v, wq, wk, wv, wo)
    out = jax.block_until_ready(out)

    ref = reference_mha(q, k, v, wq, wk, wv, wo)
    assert out.shape == (BATCH, SEQ, D_MODEL)
    # Tolerance loosened from 1e-4 only because the softmax denominator uses the
    # hardware approximate reciprocal (EUP); a real bug (scale / head order /
    # softmax) would produce O(0.1-1) errors and still trip this check.
    assert jnp.allclose(out, ref, atol=2e-3, rtol=2e-3), "mismatch vs JAX reference"

    print("KERNEL_OK")
</pallas_src>

<mosaic_0001>
module attributes {stable_mosaic.version = 11 : i64} {
  func.func @mha_kernel(%arg0: memref<3x16x32xf32, #tpu.memory_space<vmem>>, %arg1: memref<3x32x32xf32, #tpu.memory_space<vmem>>, %arg2: memref<32x32xf32, #tpu.memory_space<vmem>>, %arg3: memref<16x32xf32, #tpu.memory_space<vmem>>) attributes {dimension_semantics = [], scalar_prefetch = 0 : i64, scratch_operands = 0 : i64, tpu.core_type = #tpu.core_type<tc>} {
    %c0 = arith.constant 0 : index
    %c0_0 = arith.constant 0 : index
    %c0_1 = arith.constant 0 : index
    %0 = vector.load %arg0[%c0, %c0_0, %c0_1] : memref<3x16x32xf32, #tpu.memory_space<vmem>>, vector<3x16x32xf32>
    %c0_2 = arith.constant 0 : index
    %c0_3 = arith.constant 0 : index
    %c0_4 = arith.constant 0 : index
    %1 = vector.load %arg1[%c0_2, %c0_3, %c0_4] : memref<3x32x32xf32, #tpu.memory_space<vmem>>, vector<3x32x32xf32>
    %c0_5 = arith.constant 0 : index
    %c0_6 = arith.constant 0 : index
    %2 = vector.load %arg2[%c0_5, %c0_6] : memref<32x32xf32, #tpu.memory_space<vmem>>, vector<32x32xf32>
    %cst = arith.constant dense<0.000000e+00> : vector<3x16x32xf32>
    %3 = tpu.matmul %0, %1, %cst {dimension_numbers = #tpu.dot_dimension_numbers<[2], [1], [1], [2], [0, 0, 0, 1, 1, 2], [0], [0]>} : vector<3x16x32xf32>, vector<3x32x32xf32>, vector<3x16x32xf32> -> vector<3x16x32xf32>
    %4 = vector.extract_strided_slice %3 {offsets = [0, 0, 0], sizes = [1, 16, 32], strides = [1, 1, 1]} : vector<3x16x32xf32> to vector<1x16x32xf32>
    %5 = vector.shape_cast %4 : vector<1x16x32xf32> to vector<16x32xf32>
    %cst_7 = arith.constant 0.353553385 : f32
    %6 = vector.broadcast %cst_7 : f32 to vector<16x32xf32>
    %7 = arith.mulf %5, %6 : vector<16x32xf32>
    %8 = vector.extract_strided_slice %3 {offsets = [1, 0, 0], sizes = [1, 16, 32], strides = [1, 1, 1]} : vector<3x16x32xf32> to vector<1x16x32xf32>
    %9 = vector.shape_cast %8 : vector<1x16x32xf32> to vector<16x32xf32>
    %10 = vector.extract_strided_slice %3 {offsets = [2, 0, 0], sizes = [1, 16, 32], strides = [1, 1, 1]} : vector<3x16x32xf32> to vector<1x16x32xf32>
    %11 = vector.shape_cast %10 : vector<1x16x32xf32> to vector<16x32xf32>
    %12 = vector.shape_cast %7 : vector<16x32xf32> to vector<2x8x32xf32>
    %13 = vector.shape_cast %9 : vector<16x32xf32> to vector<2x8x32xf32>
    %14 = vector.shape_cast %11 : vector<16x32xf32> to vector<2x8x32xf32>
    %cst_8 = arith.constant 0.000000e+00 : f32
    %15 = vector.broadcast %cst_8 : f32 to vector<16x32xf32>
    %16 = vector.extract_strided_slice %12 {offsets = [0, 0, 0], sizes = [2, 8, 8], strides = [1, 1, 1]} : vector<2x8x32xf32> to vector<2x8x8xf32>
    %17 = vector.extract_strided_slice %13 {offsets = [0, 0, 0], sizes = [2, 8, 8], strides = [1, 1, 1]} : vector<2x8x32xf32> to vector<2x8x8xf32>
    %18 = vector.extract_strided_slice %14 {offsets = [0, 0, 0], sizes = [2, 8, 8], strides = [1, 1, 1]} : vector<2x8x32xf32> to vector<2x8x8xf32>
    "tpu.trace_start"() <{level = 10 : i32, message = "bqd,bkd->bqk"}> : () -> ()
    %cst_9 = arith.constant dense<0.000000e+00> : vector<2x8x8xf32>
    %19 = tpu.matmul %16, %17, %cst_9 {dimension_numbers = #tpu.dot_dimension_numbers<[2], [2], [1], [1], [0, 0, 0, 1, 1, 1], [0], [0]>} : vector<2x8x8xf32>, vector<2x8x8xf32>, vector<2x8x8xf32> -> vector<2x8x8xf32>
    "tpu.trace_stop"() : () -> ()
    %cst_10 = arith.constant dense<0xFF800000> : vector<2x8xf32>
    %20 = vector.multi_reduction <maximumf>, %19, %cst_10 [2] : vector<2x8x8xf32> to vector<2x8xf32>
    %21 = vector.shape_cast %20 : vector<2x8xf32> to vector<2x8x1xf32>
    %22 = vector.broadcast %21 : vector<2x8x1xf32> to vector<2x8x8xf32>
    %23 = arith.subf %19, %22 : vector<2x8x8xf32>
    %24 = math.exp %23 : vector<2x8x8xf32>
    %cst_11 = arith.constant dense<0.000000e+00> : vector<2x8xf32>
    %25 = vector.multi_reduction <add>, %24, %cst_11 [2] : vector<2x8x8xf32> to vector<2x8xf32>
    %26 = vector.shape_cast %25 : vector<2x8xf32> to vector<2x8x1xf32>
    %27 = tpu.reciprocal %26 {approx = true} : vector<2x8x1xf32> -> vector<2x8x1xf32>
    %28 = vector.broadcast %27 : vector<2x8x1xf32> to vector<2x8x8xf32>
    %29 = arith.mulf %24, %28 : vector<2x8x8xf32>
    "tpu.trace_start"() <{level = 10 : i32, message = "bqk,bkd->bqd"}> : () -> ()
    %cst_12 = arith.constant dense<0.000000e+00> : vector<2x8x8xf32>
    %30 = tpu.matmul %29, %18, %cst_12 {dimension_numbers = #tpu.dot_dimension_numbers<[2], [1], [1], [2], [0, 0, 0, 1, 1, 2], [0], [0]>} : vector<2x8x8xf32>, vector<2x8x8xf32>, vector<2x8x8xf32> -> vector<2x8x8xf32>
    "tpu.trace_stop"() : () -> ()
    %31 = vector.shape_cast %30 : vector<2x8x8xf32> to vector<16x8xf32>
    %32 = vector.extract_strided_slice %2 {offsets = [0, 0], sizes = [8, 32], strides = [1, 1]} : vector<32x32xf32> to vector<8x32xf32>
    %cst_13 = arith.constant dense<0.000000e+00> : vector<16x32xf32>
    %33 = tpu.matmul %31, %32, %cst_13 {dimension_numbers = #tpu.dot_dimension_numbers<[1], [0], [0], [1], [0, 0, 1, 1], [], []>} : vector<16x8xf32>, vector<8x32xf32>, vector<16x32xf32> -> vector<16x32xf32>
    %34 = arith.addf %15, %33 : vector<16x32xf32>
    %35 = vector.extract_strided_slice %12 {offsets = [0, 0, 8], sizes = [2, 8, 8], strides = [1, 1, 1]} : vector<2x8x32xf32> to vector<2x8x8xf32>
    %36 = vector.extract_strided_slice %13 {offsets = [0, 0, 8], sizes = [2, 8, 8], strides = [1, 1, 1]} : vector<2x8x32xf32> to vector<2x8x8xf32>
    %37 = vector.extract_strided_slice %14 {offsets = [0, 0, 8], sizes = [2, 8, 8], strides = [1, 1, 1]} : vector<2x8x32xf32> to vector<2x8x8xf32>
    "tpu.trace_start"() <{level = 10 : i32, message = "bqd,bkd->bqk"}> : () -> ()
    %cst_14 = arith.constant dense<0.000000e+00> : vector<2x8x8xf32>
    %38 = tpu.matmul %35, %36, %cst_14 {dimension_numbers = #tpu.dot_dimension_numbers<[2], [2], [1], [1], [0, 0, 0, 1, 1, 1], [0], [0]>} : vector<2x8x8xf32>, vector<2x8x8xf32>, vector<2x8x8xf32> -> vector<2x8x8xf32>
    "tpu.trace_stop"() : () -> ()
    %cst_15 = arith.constant dense<0xFF800000> : vector<2x8xf32>
    %39 = vector.multi_reduction <maximumf>, %38, %cst_15 [2] : vector<2x8x8xf32> to vector<2x8xf32>
    %40 = vector.shape_cast %39 : vector<2x8xf32> to vector<2x8x1xf32>
    %41 = vector.broadcast %40 : vector<2x8x1xf32> to vector<2x8x8xf32>
    %42 = arith.subf %38, %41 : vector<2x8x8xf32>
    %43 = math.exp %42 : vector<2x8x8xf32>
    %cst_16 = arith.constant dense<0.000000e+00> : vector<2x8xf32>
    %44 = vector.multi_reduction <add>, %43, %cst_16 [2] : vector<2x8x8xf32> to vector<2x8xf32>
    %45 = vector.shape_cast %44 : vector<2x8xf32> to vector<2x8x1xf32>
    %46 = tpu.reciprocal %45 {approx = true} : vector<2x8x1xf32> -> vector<2x8x1xf32>
    %47 = vector.broadcast %46 : vector<2x8x1xf32> to vector<2x8x8xf32>
    %48 = arith.mulf %43, %47 : vector<2x8x8xf32>
    "tpu.trace_start"() <{level = 10 : i32, message = "bqk,bkd->bqd"}> : () -> ()
    %cst_17 = arith.constant dense<0.000000e+00> : vector<2x8x8xf32>
    %49 = tpu.matmul %48, %37, %cst_17 {dimension_numbers = #tpu.dot_dimension_numbers<[2], [1], [1], [2], [0, 0, 0, 1, 1, 2], [0], [0]>} : vector<2x8x8xf32>, vector<2x8x8xf32>, vector<2x8x8xf32> -> vector<2x8x8xf32>
    "tpu.trace_stop"() : () -> ()
    %50 = vector.shape_cast %49 : vector<2x8x8xf32> to vector<16x8xf32>
    %51 = vector.extract_strided_slice %2 {offsets = [8, 0], sizes = [8, 32], strides = [1, 1]} : vector<32x32xf32> to vector<8x32xf32>
    %cst_18 = arith.constant dense<0.000000e+00> : vector<16x32xf32>
    %52 = tpu.matmul %50, %51, %cst_18 {dimension_numbers = #tpu.dot_dimension_numbers<[1], [0], [0], [1], [0, 0, 1, 1], [], []>} : vector<16x8xf32>, vector<8x32xf32>, vector<16x32xf32> -> vector<16x32xf32>
    %53 = arith.addf %34, %52 : vector<16x32xf32>
    %54 = vector.extract_strided_slice %12 {offsets = [0, 0, 16], sizes = [2, 8, 8], strides = [1, 1, 1]} : vector<2x8x32xf32> to vector<2x8x8xf32>
    %55 = vector.extract_strided_slice %13 {offsets = [0, 0, 16], sizes = [2, 8, 8], strides = [1, 1, 1]} : vector<2x8x32xf32> to vector<2x8x8xf32>
    %56 = vector.extract_strided_slice %14 {offsets = [0, 0, 16], sizes = [2, 8, 8], strides = [1, 1, 1]} : vector<2x8x32xf32> to vector<2x8x8xf32>
    "tpu.trace_start"() <{level = 10 : i32, message = "bqd,bkd->bqk"}> : () -> ()
    %cst_19 = arith.constant dense<0.000000e+00> : vector<2x8x8xf32>
    %57 = tpu.matmul %54, %55, %cst_19 {dimension_numbers = #tpu.dot_dimension_numbers<[2], [2], [1], [1], [0, 0, 0, 1, 1, 1], [0], [0]>} : vector<2x8x8xf32>, vector<2x8x8xf32>, vector<2x8x8xf32> -> vector<2x8x8xf32>
    "tpu.trace_stop"() : () -> ()
    %cst_20 = arith.constant dense<0xFF800000> : vector<2x8xf32>
    %58 = vector.multi_reduction <maximumf>, %57, %cst_20 [2] : vector<2x8x8xf32> to vector<2x8xf32>
    %59 = vector.shape_cast %58 : vector<2x8xf32> to vector<2x8x1xf32>
    %60 = vector.broadcast %59 : vector<2x8x1xf32> to vector<2x8x8xf32>
    %61 = arith.subf %57, %60 : vector<2x8x8xf32>
    %62 = math.exp %61 : vector<2x8x8xf32>
    %cst_21 = arith.constant dense<0.000000e+00> : vector<2x8xf32>
    %63 = vector.multi_reduction <add>, %62, %cst_21 [2] : vector<2x8x8xf32> to vector<2x8xf32>
    %64 = vector.shape_cast %63 : vector<2x8xf32> to vector<2x8x1xf32>
    %65 = tpu.reciprocal %64 {approx = true} : vector<2x8x1xf32> -> vector<2x8x1xf32>
    %66 = vector.broadcast %65 : vector<2x8x1xf32> to vector<2x8x8xf32>
    %67 = arith.mulf %62, %66 : vector<2x8x8xf32>
    "tpu.trace_start"() <{level = 10 : i32, message = "bqk,bkd->bqd"}> : () -> ()
    %cst_22 = arith.constant dense<0.000000e+00> : vector<2x8x8xf32>
    %68 = tpu.matmul %67, %56, %cst_22 {dimension_numbers = #tpu.dot_dimension_numbers<[2], [1], [1], [2], [0, 0, 0, 1, 1, 2], [0], [0]>} : vector<2x8x8xf32>, vector<2x8x8xf32>, vector<2x8x8xf32> -> vector<2x8x8xf32>
    "tpu.trace_stop"() : () -> ()
    %69 = vector.shape_cast %68 : vector<2x8x8xf32> to vector<16x8xf32>
    %70 = vector.extract_strided_slice %2 {offsets = [16, 0], sizes = [8, 32], strides = [1, 1]} : vector<32x32xf32> to vector<8x32xf32>
    %cst_23 = arith.constant dense<0.000000e+00> : vector<16x32xf32>
    %71 = tpu.matmul %69, %70, %cst_23 {dimension_numbers = #tpu.dot_dimension_numbers<[1], [0], [0], [1], [0, 0, 1, 1], [], []>} : vector<16x8xf32>, vector<8x32xf32>, vector<16x32xf32> -> vector<16x32xf32>
    %72 = arith.addf %53, %71 : vector<16x32xf32>
    %73 = vector.extract_strided_slice %12 {offsets = [0, 0, 24], sizes = [2, 8, 8], strides = [1, 1, 1]} : vector<2x8x32xf32> to vector<2x8x8xf32>
    %74 = vector.extract_strided_slice %13 {offsets = [0, 0, 24], sizes = [2, 8, 8], strides = [1, 1, 1]} : vector<2x8x32xf32> to vector<2x8x8xf32>
    %75 = vector.extract_strided_slice %14 {offsets = [0, 0, 24], sizes = [2, 8, 8], strides = [1, 1, 1]} : vector<2x8x32xf32> to vector<2x8x8xf32>
    "tpu.trace_start"() <{level = 10 : i32, message = "bqd,bkd->bqk"}> : () -> ()
    %cst_24 = arith.constant dense<0.000000e+00> : vector<2x8x8xf32>
    %76 = tpu.matmul %73, %74, %cst_24 {dimension_numbers = #tpu.dot_dimension_numbers<[2], [2], [1], [1], [0, 0, 0, 1, 1, 1], [0], [0]>} : vector<2x8x8xf32>, vector<2x8x8xf32>, vector<2x8x8xf32> -> vector<2x8x8xf32>
    "tpu.trace_stop"() : () -> ()
    %cst_25 = arith.constant dense<0xFF800000> : vector<2x8xf32>
    %77 = vector.multi_reduction <maximumf>, %76, %cst_25 [2] : vector<2x8x8xf32> to vector<2x8xf32>
    %78 = vector.shape_cast %77 : vector<2x8xf32> to vector<2x8x1xf32>
    %79 = vector.broadcast %78 : vector<2x8x1xf32> to vector<2x8x8xf32>
    %80 = arith.subf %76, %79 : vector<2x8x8xf32>
    %81 = math.exp %80 : vector<2x8x8xf32>
    %cst_26 = arith.constant dense<0.000000e+00> : vector<2x8xf32>
    %82 = vector.multi_reduction <add>, %81, %cst_26 [2] : vector<2x8x8xf32> to vector<2x8xf32>
    %83 = vector.shape_cast %82 : vector<2x8xf32> to vector<2x8x1xf32>
    %84 = tpu.reciprocal %83 {approx = true} : vector<2x8x1xf32> -> vector<2x8x1xf32>
    %85 = vector.broadcast %84 : vector<2x8x1xf32> to vector<2x8x8xf32>
    %86 = arith.mulf %81, %85 : vector<2x8x8xf32>
    "tpu.trace_start"() <{level = 10 : i32, message = "bqk,bkd->bqd"}> : () -> ()
    %cst_27 = arith.constant dense<0.000000e+00> : vector<2x8x8xf32>
    %87 = tpu.matmul %86, %75, %cst_27 {dimension_numbers = #tpu.dot_dimension_numbers<[2], [1], [1], [2], [0, 0, 0, 1, 1, 2], [0], [0]>} : vector<2x8x8xf32>, vector<2x8x8xf32>, vector<2x8x8xf32> -> vector<2x8x8xf32>
    "tpu.trace_stop"() : () -> ()
    %88 = vector.shape_cast %87 : vector<2x8x8xf32> to vector<16x8xf32>
    %89 = vector.extract_strided_slice %2 {offsets = [24, 0], sizes = [8, 32], strides = [1, 1]} : vector<32x32xf32> to vector<8x32xf32>
    %cst_28 = arith.constant dense<0.000000e+00> : vector<16x32xf32>
    %90 = tpu.matmul %88, %89, %cst_28 {dimension_numbers = #tpu.dot_dimension_numbers<[1], [0], [0], [1], [0, 0, 1, 1], [], []>} : vector<16x8xf32>, vector<8x32xf32>, vector<16x32xf32> -> vector<16x32xf32>
    %91 = arith.addf %72, %90 : vector<16x32xf32>
    %c0_29 = arith.constant 0 : index
    %c0_30 = arith.constant 0 : index
    %92 = vector.load %arg3[%c0_29, %c0_30] : memref<16x32xf32, #tpu.memory_space<vmem>>, vector<16x32xf32>
    tpu.vector_store %arg3[%c0_29, %c0_30], %91 {strides = array<i32>} : memref<16x32xf32, #tpu.memory_space<vmem>>, vector<16x32xf32>,
    return
  }
}

</mosaic_0001>

<bundles_post_ra>
// kernel: tpu_custom_call.1
= control target key start
LH: loop header
LB: loop body
LE: loop exit
PB: predicated region body
PF: predicated region fallthrough
CT: control target
= control target key end

     0   :  { %8 = vsyncpa [#allocation3], 0  ;;  %s2647_s0 = inlined_call_operand.hbm [shape: f32[3,16,32], index: 0, kind: input, shape index: {}]   ;;  %s2648_s1 = inlined_call_operand.hbm [shape: f32[3,32,32], index: 1, kind: input, shape index: {}]   ;;  %s2649_s2 = inlined_call_operand.hbm [shape: f32[32,32], index: 2, kind: input, shape index: {}]   ;;  %s2650_s3 = inlined_call_operand.hbm [shape: f32[16,32], index: 3, kind: output, shape index: {}]  }
   0x1   :  { %9 = vsyncpa [#allocation6], 0 }
   0x2   :  { %10 = vsyncpa [#allocation4], 0  ;;  %s2385_s12 = smov [#allocation5]   ;;  %s2386_s14 = smov [#allocation2]  }
   0x3   :  { %s28_s13 = sshll.u32 %s2385_s12, 4  ;;  %s16_s15 = sshll.u32 %s2386_s14, 4  ;;  %s29_s13 = int_to_ptr.vmem [resolvable:$true] %s28_s13  ;;  %s2416_s15 = int_to_ptr.vmem [resolvable:$true] %s16_s15 }
   0x4   :  { %s2291_s18 = scalar_lea.hbm %s2648_s1, 1536 }
   0x5   :  { %p2292_p0 = scmp.ne.s32.totalorder %s2648_s1, %s2291_s18  ;;  %p2295_p1 = scmp.lt.u32.totalorder %s2291_s18, %s2648_s1 }
   0x7   :  { %p2297_p2 = pnand %p2295_p1, %p2292_p0 }
   0x9   :  { %2300 = shalt.err (!%p2297_p2)
}
   0xa   :  { %s2301_s23 = scalar_lea.vmem %s29_s13, 1536  ;;  %p2306_p4 = scmp.lt.s32.totalorder %s29_s13, %s29_s13 }
   0xb   :  { %p2302_p3 = scmp.ne.s32.totalorder %s29_s13, %s2301_s23  ;;  %p2307_p5 = scmp.lt.s32.totalorder %s2301_s23, %s2301_s23 }
   0xd   :  { %p2308_p6 = por %p2307_p5, %p2306_p4 }
   0xf   :  { %p2309_p7 = pnand %p2308_p6, %p2302_p3 }
  0x11   :  { %2312 = shalt.err (!%p2309_p7)
}
  0x12   :  { %s2387_s24 = smov 128   ;;  %s2388_s25 = smov 8  }
  0x13   :  { %34 = dma.hbm_to_vmem [thread:$0]  %s2648_s1, 1536, %s29_s13, [#allocation6], %s2387_s24, %s2387_s24, %s2388_s25  }
  0x14   :  { %s2313_s30 = scalar_lea.hbm %s2647_s0, 768 }
  0x15   :  { %p2314_p8 = scmp.ne.s32.totalorder %s2647_s0, %s2313_s30  ;;  %p2317_p9 = scmp.lt.u32.totalorder %s2313_s30, %s2647_s0 }
  0x17   :  { %p2319_p10 = pnand %p2317_p9, %p2314_p8 }
  0x19   :  { %2322 = shalt.err (!%p2319_p10)
}
  0x1a   :  { %s2323_s8 = scalar_lea.vmem %s2416_s15, 768  ;;  %p2328_p12 = scmp.lt.s32.totalorder %s2416_s15, %s2416_s15 }
  0x1b   :  { %p2324_p11 = scmp.ne.s32.totalorder %s2416_s15, %s2323_s8  ;;  %p2329_p13 = scmp.lt.s32.totalorder %s2323_s8, %s2323_s8 }
  0x1d   :  { %p2330_p0 = por %p2329_p13, %p2328_p12 }
  0x1f   :  { %p2331_p1 = pnand %p2330_p0, %p2324_p11 }
  0x21   :  { %2334 = shalt.err (!%p2331_p1)
}
  0x22   :  { %22 = dma.hbm_to_vmem [thread:$0]  %s2647_s0, 768, %s2416_s15, [#allocation3], %s2387_s24, %s2387_s24, %s2388_s25  }
  0x23   :  { %s2389_s10 = smov [#allocation7]   ;;  %s2335_s14 = scalar_lea.hbm %s2649_s2, 512 }
  0x24   :  { %s40_s11 = sshll.u32 %s2389_s10, 4  ;;  %p2336_p2 = scmp.ne.s32.totalorder %s2649_s2, %s2335_s14  ;;  %s41_s11 = int_to_ptr.vmem [resolvable:$true] %s40_s11 }
  0x25   :  { %p2339_p3 = scmp.lt.u32.totalorder %s2335_s14, %s2649_s2 }
  0x27   :  { %p2341_p4 = pnand %p2339_p3, %p2336_p2 }
  0x29   :  { %2344 = shalt.err (!%p2341_p4)
}
  0x2a   :  { %s2345_s20 = scalar_lea.vmem %s41_s11, 512  ;;  %p2350_p6 = scmp.lt.s32.totalorder %s41_s11, %s41_s11 }
  0x2b   :  { %p2346_p5 = scmp.ne.s32.totalorder %s41_s11, %s2345_s20  ;;  %p2351_p7 = scmp.lt.s32.totalorder %s2345_s20, %s2345_s20 }
  0x2d   :  { %p2352_p8 = por %p2351_p7, %p2350_p6 }
  0x2f   :  { %p2353_p9 = pnand %p2352_p8, %p2346_p5 }
  0x31   :  { %2356 = shalt.err (!%p2353_p9)
}
  0x32   :  { %46 = dma.hbm_to_vmem [thread:$0]  %s2649_s2, 512, %s41_s11, [#allocation6], %s2387_s24, %s2387_s24, %s2388_s25  }
  0x33   :  { %2379 = dma.done.wait [#allocation3], 768  }
  0x34   :  { %2380 = vsyncadd [#allocation3], 4294966528 }
  0x35   :  { %2381 = dma.done.wait [#allocation6], 2048  }
  0x36   :  { %2382 = vsyncadd [#allocation6], 4294965248  ;;  %v62_v0 = vld [vmem:[#allocation5] sm:$0xff]  ;;  %v63_v1 = vld [vmem:[#allocation5 + $0x8] sm:$0xff]  ;;  %vm78_vm0 = vcmask 261120   ;;  %v2390_v16 = vmov 0.0  }
  0x37   :  { %v66_v2 = vld [vmem:[#allocation5 + $0x20] sm:$0xff]  ;;  %v2218_v3 = vpack.c.bf16 %v63_v1, %v62_v0  ;;  %v67_v4 = vld [vmem:[#allocation5 + $0x28] sm:$0xff]  ;;  %v64_v5 = vld [vmem:[#allocation5 + $0x10] sm:$0xff]  ;;  %vm2391_vm1 = vmmov 0   ;;  %vm324_vm2 = vcmask 64512   ;;  %s2392_s2 = smov 120  }
  0x38   :  { %v65_v6 = vld [vmem:[#allocation5 + $0x18] sm:$0xff]  ;;  %v2226_v7 = vpack.c.bf16 %v67_v4, %v66_v2  ;;  %v68_v9 = vld [vmem:[#allocation5 + $0x30] sm:$0xff]  ;;  %v58_v13 = vld [vmem:[#allocation2 + $0x10] sm:$0xff]  ;;  %s2393_s21 = smov 112   ;;  %s2394_s22 = smov 104  }
  0x39   :  { %v2222_v8 = vpack.c.bf16 %v65_v6, %v64_v5  ;;  %v69_v10 = vld [vmem:[#allocation5 + $0x38] sm:$0xff]  ;;  %v56_v11 = vld [vmem:[#allocation2] sm:$0xff]  ;;  %2219 = vmatprep.subr.bf16.mxu0 %v2218_v3  ;;  %2104 = vmatprep.mubr.msk.f32.mxu1 %vm78_vm0, %v58_v13  ;;  %v59_v15 = vld [vmem:[#allocation2 + $0x18] sm:$0xff]  ;;  %s2395_s23 = smov [#allocation8]  }
  0x3a   :  { %v2230_v12 = vpack.c.bf16 %v69_v10, %v68_v9  ;;  %2093 = vmatprep.mubr.msk.f32.mxu0 %vm78_vm0, %v56_v11  ;;  %2227 = vmatprep.subr.bf16.mxu1 %v2226_v7  ;;  %v57_v14 = vld [vmem:[#allocation2 + $0x8] sm:$0xff]  ;;  %v70_v23 = vld [vmem:[#allocation5 + $0x40] sm:$0xff]  ;;  %v71_v24 = vld [vmem:[#allocation5 + $0x48] sm:$0xff]  ;;  %s1972_s26 = sshll.u32 %s2395_s23, 4  ;;  %s1973_s26 = int_to_ptr.vmem [resolvable:$true] %s1972_s26 }
  0x3b   :  { %2221 = vmatpush3.bf16.msra.mxu0 %v2218_v3  ;;  %2229 = vmatpush3.bf16.msra.mxu1 %v2226_v7  ;;  %v72_v25 = vld [vmem:[#allocation5 + $0x50] sm:$0xff]  ;;  %v2234_v26 = vpack.c.bf16 %v71_v24, %v70_v23  ;;  %v73_v27 = vld [vmem:[#allocation5 + $0x58] sm:$0xff]  ;;  %s2357_s27 = scalar_lea.vmem %s1973_s26, 256  ;;  %p2362_p11 = scmp.lt.s32.totalorder %s1973_s26, %s1973_s26 }
  0x3c   :  { %2223 = vmatprep.subr.bf16.mxu0 %v2222_v8  ;;  %2231 = vmatprep.subr.bf16.mxu1 %v2230_v12  ;;  %v60_v28 = vld [vmem:[#allocation2 + $0x20] sm:$0xff]  ;;  %v2238_v29 = vpack.c.bf16 %v73_v27, %v72_v25  ;;  %v61_v30 = vld [vmem:[#allocation2 + $0x28] sm:$0xff]  ;;  %p2358_p10 = scmp.ne.s32.totalorder %s1973_s26, %s2357_s27  ;;  %p2363_p12 = scmp.lt.s32.totalorder %s2357_s27, %s2357_s27 }
  0x3e   :  { %p2364_p13 = por %p2363_p12, %p2362_p11 }
  0x3f   :  { %2225 = vmatpush3.bf16.msra.mxu0 %v2222_v8  ;;  %2233 = vmatpush3.bf16.msra.mxu1 %v2230_v12 }
  0x40   :  { %2118 = vmatprep.subr.mxu1 %v2390_v16  ;;  %2235 = vmatprep.subr.bf16.mxu0 %v2234_v26  ;;  %p2365_p0 = pnand %p2364_p13, %p2358_p10 }
  0x42   :  { %2094 = vmatmul.mubr.msk.f32.vlgmr.msra.gmra.mrb[0].mxu0 %vm78_vm0, %v57_v14  ;;  %2105 = vmatmul.mubr.msk.f32.vlgmr.msra.gmra.mrb[0].mxu1 %vm78_vm0, %v59_v15 }
  0x43   :  { %2120 = vmatprep.mubr.msk.f32.mxu1 %vm2391_vm1, %v2390_v16  ;;  %2115 = vmatprep.mubr.msk.f32.mxu0 %vm78_vm0, %v60_v28 }
  0x44   :  { %2237 = vmatpush3.bf16.msra.mxu0 %v2234_v26 }
  0x45   :  { %2239 = vmatprep.subr.bf16.mxu0 %v2238_v29 }
  0x48   :  { %2241 = vmatpush3.bf16.msra.mxu0 %v2238_v29 }
  0x49   :  { %2138 = vmatprep.subr.mxu0 %v2390_v16 }
  0x4b   :  { %2116 = vmatmul.mubr.msk.f32.vlgmr.msra.gmra.mrb[2].mxu0 %vm78_vm0, %v61_v30 }
  0x4c   :  { %2140 = vmatprep.mubr.msk.f32.mxu0 %vm2391_vm1, %v2390_v16 }
 0x115   :  { %v2095_v17 = vpop.f32.mrb[0].mxu0  ;;  %v2475_v18 = vpop.f32.mrb[0].mxu1 }
 0x116   :  { %v151_v19 = vpop.f32.mrb[1].mxu0  ;;  %v2479_v21 = vpop.f32.mrb[1].mxu1  ;;  %v2490_v22 = vmul.f32 0.35355338, %v2095_v17 }
 0x117   :  { %v2477_v20 = vmul.f32 0.35355338, %v151_v19  ;;  %2119 = vmatpush3.xpose.msk.msra.mxu1 %vm324_vm2, %v2479_v21 }
 0x118   :  { %2123 = vmatprep.subr.mxu1 %v2390_v16 }
 0x11a   :  { %2121 = vmatmul.mubr.msk.f32.vlgmr.msra.gmra.mrb[2].mxu1 %vm324_vm2, %v2477_v20 }
 0x11b   :  { %2124 = vmatpush3.xpose.msk.msra.mxu1 %vm324_vm2, %v2475_v18  ;;  %2125 = vmatprep.mubr.msk.f32.mxu1 %vm2391_vm1, %v2390_v16 }
 0x11c   :  { %2128 = vmatprep.subr.mxu1 %v2390_v16 }
 0x11e   :  { %2126 = vmatmul.mubr.msk.f32.vlgmr.msra.gmra.mrb[4].mxu1 %vm324_vm2, %v2490_v22  ;;  %v2510_v47 = vpop.f32.mrb[2].mxu0 }
 0x11f   :  { %2130 = vmatprep.mubr.msk.f32.mxu1 %vm2391_vm1, %v2390_v16  ;;  %v2512_v48 = vpop.f32.mrb[3].mxu0 }
 0x120   :  { %2129 = vmatpush3.msra.mxu1 %v2512_v48 }
 0x121   :  { %2133 = vmatprep.subr.mxu1 %v2390_v16 }
 0x1ed   :  { %v397_v31 = vpop.f32.mrb[2].mxu1 }
 0x1ee   :  { %v2122_v32 = vpop.f32.mrb[3].mxu1  ;;  %v477_v33 = vsel %vm324_vm2, %v397_v31, -inf }
 0x1ef   :  { %478 = vmax.xlane.f32.xlu0 %v477_v33 }
 0x1f1   :  { %v473_v34 = vpop.f32.mrb[4].mxu1 }
 0x1f2   :  { %v2127_v35 = vpop.f32.mrb[5].mxu1  ;;  %v480_v36 = vsel %vm324_vm2, %v473_v34, -inf }
 0x1f3   :  { %481 = vmax.xlane.f32.xlu0 %v480_v36 }
 0x209   :  { %725 = vrot.lane.b32.xlu0 %v2475_v18, %s2392_s2 }
 0x27c   :  { %v479_v37 = vpop.xlane.xlu0 %478 }
 0x27d   :  { %v483_v38 = vsub.f32 %v397_v31, %v479_v37 }
 0x27f   :  { %v485_v39 = vmul.f32 1.442695, %v483_v38  ;;  %v75_v38 = vld [vmem:[#allocation7 + $0x8] sm:$0xff] }
 0x280   :  { %v482_v40 = vpop.xlane.xlu0 %481 }
 0x281   :  { %2259 = vpow2.f32 %v485_v39  ;;  %v484_v41 = vsub.f32 %v473_v34, %v482_v40  ;;  %v74_v39 = vld [vmem:[#allocation7] sm:$0xff] }
 0x283   :  { %v487_v42 = vmul.f32 1.442695, %v484_v41 }
 0x284   :  { %v726_v58 = vpop.permute.xlu0 %725 }
 0x285   :  { %2261 = vpow2.f32 %v487_v42 }
 0x28b   :  { %v2260_v43 = vpop.eup %2259 }
 0x28c   :  { %v489_v44 = vsel %vm324_vm2, %v2260_v43, 0.0 }
 0x28d   :  { %490 = vadd.xlane.f32.xlu1 %v489_v44 }
 0x28f   :  { %v2262_v45 = vpop.eup %2261 }
 0x290   :  { %v492_v46 = vsel %vm324_vm2, %v2262_v45, 0.0 }
 0x291   :  { %493 = vadd.xlane.f32.xlu1 %v492_v46 }
 0x2a2   :  { %723 = vrot.lane.b32.xlu1 %v2490_v22, %s2392_s2 }
 0x2a6   :  { %647 = vrot.lane.b32.xlu1 %v2479_v21, %s2392_s2 }
 0x2aa   :  { %645 = vrot.lane.b32.xlu1 %v2477_v20, %s2392_s2 }
 0x2ae   :  { %1141 = vrot.lane.b32.xlu1 %v2479_v21, %s2393_s21 }
 0x31a   :  { %v491_v49 = vpop.xlane.xlu1 %490 }
 0x31b   :  { %2263 = vrcp.f32 %v491_v49 }
 0x31e   :  { %v494_v50 = vpop.xlane.xlu1 %493 }
 0x31f   :  { %2265 = vrcp.f32 %v494_v50 }
 0x322   :  { %v724_v51 = vpop.permute.xlu1 %723 }
 0x325   :  { %v2264_v52 = vpop.eup %2263 }
 0x326   :  { %v497_v53 = vmul.f32 %v2264_v52, %v2260_v43  ;;  %v648_v54 = vpop.permute.xlu1 %647 }
 0x327   :  { %2139 = vmatpush3.xpose.msk.msra.mxu0 %vm324_vm2, %v648_v54 }
 0x328   :  { %2131 = vmatmul.mubr.msk.f32.vlgmr.msra.gmra.mrb[6].mxu1 %vm324_vm2, %v497_v53  ;;  %2148 = vmatprep.subr.mxu0 %v2390_v16 }
 0x329   :  { %v2266_v55 = vpop.eup %2265  ;;  %2134 = vmatpush3.msra.mxu1 %v2510_v47  ;;  %2135 = vmatprep.mubr.msk.f32.mxu1 %vm2391_vm1, %v2390_v16 }
 0x32a   :  { %v498_v56 = vmul.f32 %v2266_v55, %v2262_v45  ;;  %v646_v57 = vpop.permute.xlu1 %645  ;;  %2143 = vmatprep.subr.mxu1 %v2390_v16  ;;  %v76_v55 = vld [vmem:[#allocation7 + $0x10] sm:$0xff] }
 0x32b   :  { %2141 = vmatmul.mubr.msk.f32.vlgmr.msra.gmra.mrb[4].mxu0 %vm324_vm2, %v646_v57 }
 0x32c   :  { %2136 = vmatmul.mubr.msk.f32.vlgmr.msra.gmra.mrb[8].mxu1 %vm324_vm2, %v498_v56  ;;  %2150 = vmatprep.mubr.msk.f32.mxu0 %vm2391_vm1, %v2390_v16 }
 0x32d   :  { %2145 = vmatprep.mubr.msk.f32.mxu1 %vm2391_vm1, %v2390_v16 }
 0x32e   :  { %v1142_v11 = vpop.permute.xlu1 %1141 }
 0x330   :  { %2144 = vmatpush3.xpose.msk.msra.mxu1 %vm324_vm2, %v726_v58 }
 0x331   :  { %2153 = vmatprep.subr.mxu1 %v2390_v16 }
 0x333   :  { %2146 = vmatmul.mubr.msk.f32.vlgmr.msra.gmra.mrb[10].mxu1 %vm324_vm2, %v724_v51 }
 0x334   :  { %2155 = vmatprep.mubr.msk.f32.mxu1 %vm2391_vm1, %v2390_v16 }
 0x3fb   :  { %v2540_v59 = vpop.f32.mrb[6].mxu1 }
 0x3fc   :  { %v2132_v60 = vpop.f32.mrb[7].mxu1 }
 0x3fe   :  { %v719_v61 = vpop.f32.mrb[4].mxu0 }
 0x3ff   :  { %v2542_v62 = vpop.f32.mrb[8].mxu1  ;;  %v2142_v63 = vpop.f32.mrb[5].mxu0  ;;  %v801_v10 = vsel %vm324_vm2, %v719_v61, -inf }
 0x400   :  { %v2137_v0 = vpop.f32.mrb[9].mxu1 }
 0x406   :  { %v797_v1 = vpop.f32.mrb[10].mxu1 }
 0x407   :  { %v2147_v2 = vpop.f32.mrb[11].mxu1  ;;  %v804_v3 = vsel %vm324_vm2, %v797_v1, -inf }
 0x408   :  { %805 = vmax.xlane.f32.xlu0 %v804_v3 }
 0x41e   :  { %901 = vrot.lane.b32.xlu0 %v2510_v47, %s2392_s2 }
 0x422   :  { %1139 = vrot.lane.b32.xlu0 %v2477_v20, %s2393_s21 }
 0x426   :  { %1217 = vrot.lane.b32.xlu0 %v2490_v22, %s2393_s21 }
 0x495   :  { %v806_v4 = vpop.xlane.xlu0 %805 }
 0x496   :  { %v808_v5 = vsub.f32 %v797_v1, %v806_v4 }
 0x498   :  { %v811_v6 = vmul.f32 1.442695, %v808_v5 }
 0x499   :  { %v902_v7 = vpop.permute.xlu0 %901 }
 0x49a   :  { %2267 = vpow2.f32 %v811_v6  ;;  %2154 = vmatpush3.msra.mxu1 %v902_v7 }
 0x49b   :  { %2168 = vmatprep.subr.mxu1 %v2390_v16 }
 0x49d   :  { %v1140_v15 = vpop.permute.xlu0 %1139 }
 0x4a1   :  { %v1218_v19 = vpop.permute.xlu0 %1217 }
 0x4a4   :  { %v2268_v8 = vpop.eup %2267 }
 0x4a5   :  { %v816_v9 = vsel %vm324_vm2, %v2268_v8, 0.0 }
 0x4a6   :  { %817 = vadd.xlane.f32.xlu1 %v816_v9 }
 0x4b7   :  { %1219 = vrot.lane.b32.xlu1 %v2475_v18, %s2393_s21 }
 0x4db   :  { %802 = vmax.xlane.f32.xlu1 %v801_v10 }
 0x533   :  { %v818_v12 = vpop.xlane.xlu1 %817 }
 0x534   :  { %2269 = vrcp.f32 %v818_v12 }
 0x537   :  { %v1220_v17 = vpop.permute.xlu1 %1219 }
 0x53e   :  { %v2270_v13 = vpop.eup %2269 }
 0x53f   :  { %v822_v14 = vmul.f32 %v2270_v13, %v2268_v8 }
 0x541   :  { %2156 = vmatmul.mubr.msk.f32.vlgmr.msra.gmra.mrb[12].mxu1 %vm324_vm2, %v822_v14 }
 0x542   :  { %2169 = vmatpush3.xpose.msk.msra.mxu1 %vm324_vm2, %v1142_v11  ;;  %2170 = vmatprep.mubr.msk.f32.mxu1 %vm2391_vm1, %v2390_v16 }
 0x543   :  { %2173 = vmatprep.subr.mxu1 %v2390_v16 }
 0x545   :  { %2171 = vmatmul.mubr.msk.f32.vlgmr.msra.gmra.mrb[14].mxu1 %vm324_vm2, %v1140_v15 }
 0x546   :  { %2174 = vmatpush3.xpose.msk.msra.mxu1 %vm324_vm2, %v1220_v17  ;;  %2175 = vmatprep.mubr.msk.f32.mxu1 %vm2391_vm1, %v2390_v16 }
 0x547   :  { %2183 = vmatprep.subr.mxu1 %v2390_v16 }
 0x549   :  { %2176 = vmatmul.mubr.msk.f32.vlgmr.msra.gmra.mrb[16].mxu1 %vm324_vm2, %v1218_v19 }
 0x54a   :  { %2185 = vmatprep.mubr.msk.f32.mxu1 %vm2391_vm1, %v2390_v16 }
 0x568   :  { %v803_v23 = vpop.xlane.xlu1 %802 }
 0x569   :  { %v807_v24 = vsub.f32 %v719_v61, %v803_v23 }
 0x56b   :  { %v809_v25 = vmul.f32 1.442695, %v807_v24 }
 0x56d   :  { %2271 = vpow2.f32 %v809_v25 }
 0x577   :  { %v2272_v26 = vpop.eup %2271 }
 0x578   :  { %v813_v27 = vsel %vm324_vm2, %v2272_v26, 0.0 }
 0x579   :  { %814 = vadd.xlane.f32.xlu0 %v813_v27 }
 0x58f   :  { %824 = vrot.lane.b32.xlu0 %v2512_v48, %s2392_s2 }
 0x593   :  { %1393 = vrot.lane.b32.xlu0 %v2510_v47, %s2393_s21 }
 0x597   :  { %1554 = vrot.lane.b32.xlu0 %v2479_v21, %s2394_s22 }
 0x59b   :  { %1632 = vrot.lane.b32.xlu0 %v2475_v18, %s2394_s22 }
 0x59f   :  { %1552 = vrot.lane.b32.xlu0 %v2477_v20, %s2394_s22 }
 0x606   :  { %v815_v28 = vpop.xlane.xlu0 %814 }
 0x607   :  { %2273 = vrcp.f32 %v815_v28 }
 0x60a   :  { %v825_v29 = vpop.permute.xlu0 %824 }
 0x60b   :  { %2149 = vmatpush3.msra.mxu0 %v825_v29 }
 0x60c   :  { %2158 = vmatprep.subr.mxu0 %v75_v38 }
 0x60e   :  { %v1394_v30 = vpop.permute.xlu0 %1393 }
 0x60f   :  { %2184 = vmatpush3.msra.mxu1 %v1394_v30 }
 0x610   :  { %2193 = vmatprep.subr.mxu1 %v2390_v16 }
 0x611   :  { %v2274_v31 = vpop.eup %2273 }
 0x612   :  { %v821_v32 = vmul.f32 %v2274_v31, %v2272_v26  ;;  %v1555_v57 = vpop.permute.xlu0 %1554 }
 0x614   :  { %2151 = vmatmul.mubr.msk.f32.vlgmr.msra.gmra.mrb[6].mxu0 %vm324_vm2, %v821_v32  ;;  %v973_v33 = vpop.f32.mrb[12].mxu1  ;;  %v77_v32 = vld [vmem:[#allocation7 + $0x18] sm:$0xff] }
 0x615   :  { %v2157_v21 = vpop.f32.mrb[13].mxu1  ;;  %2159 = vmatpush3.msra.mxu0 %v75_v38 }
 0x616   :  { %2163 = vmatprep.subr.mxu0 %v74_v39  ;;  %v1633_v61 = vpop.permute.xlu0 %1632 }
 0x618   :  { %v1213_v34 = vpop.f32.mrb[14].mxu1 }
 0x619   :  { %v2172_v35 = vpop.f32.mrb[15].mxu1  ;;  %v1295_v18 = vsel %vm324_vm2, %v1213_v34, -inf }
 0x61a   :  { %1296 = vmax.xlane.f32.xlu1 %v1295_v18  ;;  %v1553_v63 = vpop.permute.xlu0 %1552 }
 0x61c   :  { %v1291_v20 = vpop.f32.mrb[16].mxu1 }
 0x61d   :  { %v2177_v36 = vpop.f32.mrb[17].mxu1  ;;  %v1298_v37 = vsel %vm324_vm2, %v1291_v20, -inf }
 0x61e   :  { %1299 = vmax.xlane.f32.xlu1 %v1298_v37 }
 0x6a7   :  { %v1297_v40 = vpop.xlane.xlu1 %1296 }
 0x6a8   :  { %v1301_v41 = vsub.f32 %v1213_v34, %v1297_v40 }
 0x6aa   :  { %v1303_v42 = vmul.f32 1.442695, %v1301_v41 }
 0x6ab   :  { %v1300_v43 = vpop.xlane.xlu1 %1299 }
 0x6ac   :  { %2275 = vpow2.f32 %v1303_v42  ;;  %v1302_v44 = vsub.f32 %v1291_v20, %v1300_v43 }
 0x6ae   :  { %v1305_v45 = vmul.f32 1.442695, %v1302_v44 }
 0x6b0   :  { %2277 = vpow2.f32 %v1305_v45 }
 0x6b6   :  { %v2276_v46 = vpop.eup %2275 }
 0x6b7   :  { %v1307_v49 = vsel %vm324_vm2, %v2276_v46, 0.0 }
 0x6b8   :  { %1308 = vadd.xlane.f32.xlu1 %v1307_v49 }
 0x6ba   :  { %v2278_v50 = vpop.eup %2277 }
 0x6bb   :  { %v1310_v51 = vsel %vm324_vm2, %v2278_v50, 0.0 }
 0x6bc   :  { %1311 = vadd.xlane.f32.xlu1 %v1310_v51 }
 0x6cd   :  { %1317 = vrot.lane.b32.xlu1 %v2512_v48, %s2393_s21 }
 0x6d1   :  { %1630 = vrot.lane.b32.xlu1 %v2490_v22, %s2394_s22 }
 0x6e7   :  { %v896_v52 = vpop.f32.mrb[6].mxu0 }
 0x6e8   :  { %v2152_v53 = vpop.f32.mrb[7].mxu0  ;;  %2160 = vmatprep.mubr.msk.f32.mxu0 %vm324_vm2, %v896_v52 }
 0x6e9   :  { %2161 = vmatmul.mubr.msk.f32.vlgmr.msra.gmra.mrb[8].mxu0 %vm324_vm2, %v973_v33 }
 0x6ea   :  { %2165 = vmatprep.mubr.msk.f32.mxu0 %vm324_vm2, %v2540_v59  ;;  %2164 = vmatpush3.msra.mxu0 %v74_v39 }
 0x6eb   :  { %2178 = vmatprep.subr.mxu0 %v2390_v16 }
 0x6f1   :  { %2166 = vmatmul.mubr.msk.f32.vlgmr.msra.gmra.mrb[8].mxu0 %vm324_vm2, %v2542_v62 }
 0x6f2   :  { %2180 = vmatprep.mubr.msk.f32.mxu0 %vm2391_vm1, %v2390_v16 }
 0x745   :  { %v1309_v54 = vpop.xlane.xlu1 %1308 }
 0x746   :  { %2279 = vrcp.f32 %v1309_v54 }
 0x749   :  { %v1312_v22 = vpop.xlane.xlu1 %1311 }
 0x74a   :  { %2281 = vrcp.f32 %v1312_v22 }
 0x74d   :  { %v1318_v56 = vpop.permute.xlu1 %1317 }
 0x74e   :  { %2179 = vmatpush3.msra.mxu0 %v1318_v56 }
 0x74f   :  { %2188 = vmatprep.subr.mxu0 %v76_v55 }
 0x750   :  { %v2280_v58 = vpop.eup %2279 }
 0x751   :  { %v1315_v59 = vmul.f32 %v2280_v58, %v2276_v46  ;;  %v1631_v4 = vpop.permute.xlu1 %1630 }
 0x753   :  { %2181 = vmatmul.mubr.msk.f32.vlgmr.msra.gmra.mrb[10].mxu0 %vm324_vm2, %v1315_v59 }
 0x754   :  { %v2282_v60 = vpop.eup %2281  ;;  %2189 = vmatpush3.msra.mxu0 %v76_v55 }
 0x755   :  { %v1316_v62 = vmul.f32 %v2282_v60, %v2278_v50  ;;  %2198 = vmatprep.subr.mxu0 %v2390_v16 }
 0x757   :  { %2186 = vmatmul.mubr.msk.f32.vlgmr.msra.gmra.mrb[18].mxu1 %vm324_vm2, %v1316_v62 }
 0x758   :  { %2194 = vmatpush3.xpose.msk.msra.mxu1 %vm324_vm2, %v1555_v57  ;;  %2195 = vmatprep.mubr.msk.f32.mxu1 %vm2391_vm1, %v2390_v16 }
 0x759   :  { %2203 = vmatprep.subr.mxu1 %v2390_v16 }
 0x75b   :  { %2196 = vmatmul.mubr.msk.f32.vlgmr.msra.gmra.mrb[20].mxu1 %vm324_vm2, %v1553_v63 }
 0x75c   :  { %2205 = vmatprep.mubr.msk.f32.mxu1 %vm2391_vm1, %v2390_v16 }
 0x826   :  { %v1389_v0 = vpop.f32.mrb[10].mxu0 }
 0x827   :  { %v2182_v1 = vpop.f32.mrb[11].mxu0  ;;  %2190 = vmatprep.mubr.msk.f32.mxu0 %vm324_vm2, %v1389_v0 }
 0x82a   :  { %v1465_v2 = vpop.f32.mrb[18].mxu1 }
 0x82b   :  { %v2187_v3 = vpop.f32.mrb[19].mxu1  ;;  %2191 = vmatmul.mubr.msk.f32.vlgmr.msra.gmra.mrb[8].mxu0 %vm324_vm2, %v1465_v2 }
 0x82c   :  { %2199 = vmatpush3.xpose.msk.msra.mxu0 %vm324_vm2, %v1633_v61  ;;  %2200 = vmatprep.mubr.msk.f32.mxu0 %vm2391_vm1, %v2390_v16 }
 0x82d   :  { %2208 = vmatprep.subr.mxu0 %v2390_v16 }
 0x82e   :  { %v1626_v5 = vpop.f32.mrb[20].mxu1 }
 0x82f   :  { %v2197_v6 = vpop.f32.mrb[21].mxu1  ;;  %2201 = vmatmul.mubr.msk.f32.vlgmr.msra.gmra.mrb[12].mxu0 %vm324_vm2, %v1631_v4  ;;  %v1708_v7 = vsel %vm324_vm2, %v1626_v5, -inf }
 0x830   :  { %1709 = vmax.xlane.f32.xlu0 %v1708_v7  ;;  %2210 = vmatprep.mubr.msk.f32.mxu0 %vm2391_vm1, %v2390_v16 }
 0x8bd   :  { %v1710_v8 = vpop.xlane.xlu0 %1709 }
 0x8be   :  { %v1714_v9 = vsub.f32 %v1626_v5, %v1710_v8 }
 0x8c0   :  { %v1716_v10 = vmul.f32 1.442695, %v1714_v9 }
 0x8c2   :  { %2283 = vpow2.f32 %v1716_v10 }
 0x8cc   :  { %v2284_v11 = vpop.eup %2283 }
 0x8cd   :  { %v1720_v12 = vsel %vm324_vm2, %v2284_v11, 0.0 }
 0x8ce   :  { %1721 = vadd.xlane.f32.xlu0 %v1720_v12 }
 0x902   :  { %v1704_v13 = vpop.f32.mrb[12].mxu0 }
 0x903   :  { %v2202_v14 = vpop.f32.mrb[13].mxu0  ;;  %v1711_v15 = vsel %vm324_vm2, %v1704_v13, -inf }
 0x904   :  { %1712 = vmax.xlane.f32.xlu1 %v1711_v15 }
 0x915   :  { %1806 = vrot.lane.b32.xlu1 %v2510_v47, %s2394_s22 }
 0x95b   :  { %v1722_v26 = vpop.xlane.xlu0 %1721 }
 0x991   :  { %v1713_v17 = vpop.xlane.xlu1 %1712 }
 0x992   :  { %v1715_v19 = vsub.f32 %v1704_v13, %v1713_v17 }
 0x994   :  { %v1718_v23 = vmul.f32 1.442695, %v1715_v19 }
 0x995   :  { %v1807_v16 = vpop.permute.xlu1 %1806 }
 0x996   :  { %2285 = vpow2.f32 %v1718_v23  ;;  %2209 = vmatpush3.msra.mxu0 %v1807_v16 }
 0x997   :  { %2287 = vrcp.f32 %v1722_v26  ;;  %2213 = vmatprep.subr.mxu0 %v77_v32 }
 0x9a0   :  { %v2286_v24 = vpop.eup %2285 }
 0x9a1   :  { %v1723_v25 = vsel %vm324_vm2, %v2286_v24, 0.0  ;;  %v2288_v28 = vpop.eup %2287 }
 0x9a2   :  { %1724 = vadd.xlane.f32.xlu0 %v1723_v25  ;;  %v1728_v29 = vmul.f32 %v2288_v28, %v2284_v11 }
 0x9b8   :  { %1730 = vrot.lane.b32.xlu0 %v2512_v48, %s2394_s22 }
 0xa2f   :  { %v1725_v27 = vpop.xlane.xlu0 %1724 }
 0xa30   :  { %2289 = vrcp.f32 %v1725_v27 }
 0xa33   :  { %v1731_v47 = vpop.permute.xlu0 %1730 }
 0xa34   :  { %2204 = vmatpush3.msra.mxu1 %v1731_v47 }
 0xa35   :  { %2206 = vmatmul.mubr.msk.f32.vlgmr.msra.gmra.mrb[22].mxu1 %vm324_vm2, %v1728_v29 }
 0xa3a   :  { %v2290_v30 = vpop.eup %2289 }
 0xa3b   :  { %v1729_v31 = vmul.f32 %v2290_v30, %v2286_v24 }
 0xa3d   :  { %2211 = vmatmul.mubr.msk.f32.vlgmr.msra.gmra.mrb[14].mxu0 %vm324_vm2, %v1729_v31 }
 0xa3e   :  { %2214 = vmatpush3.msra.mxu0 %v77_v32 }
 0xb08   :  { %v1802_v33 = vpop.f32.mrb[22].mxu1 }
 0xb09   :  { %v2207_v21 = vpop.f32.mrb[23].mxu1  ;;  %2215 = vmatprep.mubr.msk.f32.mxu0 %vm324_vm2, %v1802_v33 }
 0xb10   :  { %v1878_v48 = vpop.f32.mrb[14].mxu0 }
 0xb11   :  { %v2212_v34 = vpop.f32.mrb[15].mxu0  ;;  %2216 = vmatmul.mubr.msk.f32.vlgmr.msra.gmra.mrb[8].mxu0 %vm324_vm2, %v1878_v48 }
 0xbe4   :  { %v2217_v35 = vpop.f32.mrb[8].mxu0 }
 0xbe5   :  { %1966 = vst.msk [vmem:[#allocation8 + $0x8] sm:$0xff] %vm78_vm0, %v2217_v35  ;;  %v1954_v18 = vpop.f32.mrb[9].mxu0 }
 0xbe6   :  { %1965 = vst.msk [vmem:[#allocation8] sm:$0xff] %vm78_vm0, %v1954_v18 }
 0xbe7   :  { %2368 = shalt.err (!%p2365_p0)
}
 0xbe8   :  { %s2369_s30 = scalar_lea.hbm %s2650_s3, 256 }
 0xbe9   :  { %p2370_p1 = scmp.ne.s32.totalorder %s2650_s3, %s2369_s30  ;;  %p2373_p2 = scmp.lt.u32.totalorder %s2369_s30, %s2650_s3 }
 0xbeb   :  { %p2375_p3 = pnand %p2373_p2, %p2370_p1 }
 0xbed   :  { %2378 = shalt.err (!%p2375_p3)
}
 0xbee   :  { %1978 = dma.vmem_to_hbm [thread:$0]  %s1973_s26, 256, %s2650_s3, [#allocation4], %s2387_s24, %s2387_s24, %s2388_s25  }
 0xbef   :  { %2383 = dma.done.wait [#allocation4], 256  }
 0xbf0   :  { %2384 = vsyncadd [#allocation4], 4294967040 }
 0xbf1   :  { %1982 = vsyncpa [#allocation3], 1 }
 0xbf2   :  { %1983 = vsyncpa [#allocation6], 1 }
 0xbf3   :  { %1984 = vsyncpa [#allocation4], 1 }

</bundles_post_ra>
